<compile_context>
chip_gen: v7x
topology: tpu7x:2x2x1
jax: 0.10.0
libtpu: 0.0.40
codegen_flags: <defaults>
</compile_context>

<pallas_src>
import functools

import numpy as np

import jax
import jax.numpy as jnp
from jax.experimental import pallas as pl
from jax.experimental.pallas import tpu as pltpu


_VMEM_SPEC = pl.BlockSpec(memory_space=pltpu.MemorySpace.VMEM)


def _fused_forward_kernel(num_layers, T, B, H, cdt,
                          xp0_ref, whh0_ref, *refs):
    """Fused forward pass (everything after the embedding gather).

    xp0_ref : (T, B, H)   layer-0 input projection x@W_ih0 + b0 (host-folded).
    whh0_ref: (H, H)      layer-0 recurrent weight (pre-transposed).
    refs    : per layer l>=1: W_ih^T (H,H), W_hh^T (H,H), b_ih+b_hh (1,H);
              then W_all (H, T*8)   fused Linear1@Linear2 chunks,
                   b_fused (1, 8)   fused bias,
                   mask (T*B, T*8), sel (B, T*B), csum (T*8, 8)  constant
                   selector matrices implementing the raw .view on the MXU;
              then out_ref (B, 8) and act_ref VMEM scratch (T*B, H).
    """
    n_up = 3 * (num_layers - 1)
    upper = refs[:n_up]
    (wall_ref, bf_ref, mask_ref, sel_ref, csum_ref,
     out_ref, act_ref) = refs[n_up:]

    f32 = jnp.float32

    # ---- hoisted weight loads (one ref read per tensor, optional bf16 cast) ----
    whh = [whh0_ref[...].astype(cdt)]
    wih = [None]
    bias = [None]
    for l in range(1, num_layers):
        wih.append(upper[3 * (l - 1) + 0][...].astype(cdt))
        whh.append(upper[3 * (l - 1) + 1][...].astype(cdt))
        bias.append(upper[3 * (l - 1) + 2][...])            # (1, H), stays f32

    # ---- wavefront-scheduled stacked tanh RNN ----------------------------------
    # Hidden states stay in vregs; at unrolled step w we compute layer l's output
    # for timestep t = w - l for every active layer (independent MXU pushes).
    h = [jnp.zeros((B, H), f32) for _ in range(num_layers)]
    for w in range(T + num_layers - 1):
        h_in = list(h)                       # snapshot: all reads are step-(w-1) values
        for l in range(max(0, w - T + 1), min(num_layers, w + 1)):
            t = w - l
            rec = jnp.dot(h_in[l].astype(cdt), whh[l],
                          preferred_element_type=f32)
            if l == 0:
                pre = xp0_ref[t] + rec       # xp0 already contains x@W_ih0 + b0
            else:
                pre = (jnp.dot(h_in[l - 1].astype(cdt), wih[l],
                               preferred_element_type=f32)
                       + rec + bias[l])
            hn = jnp.tanh(pre)
            h[l] = hn
            if l == num_layers - 1:
                # Write-only slab (time-major rows t*B..t*B+B-1); not re-read until
                # the epilogue, so these stores stay off the recurrence chain.
                act_ref[t * B:(t + 1) * B, :] = hn

    # ---- epilogue: Linear1 folded into Linear2, raw .view via masked block
    #      contractions, ONE softmax, ONE full-block store -----------------------
    c0 = act_ref[...]                                              # (T*B, H)
    z = jnp.dot(c0.astype(cdt), wall_ref[...].astype(cdt),
                preferred_element_type=f32)                        # (T*B, T*8)
    zm = z * mask_ref[...]                       # keep only each row's view chunk
    y = jnp.dot(sel_ref[...], zm, preferred_element_type=f32)      # (B, T*8)
    logits = (jnp.dot(y, csum_ref[...], preferred_element_type=f32)
              + bf_ref[...])                                       # (B, 8)

    m = jnp.max(logits, axis=1, keepdims=True)
    e = jnp.exp(logits - m)
    out_ref[...] = (e / jnp.sum(e, axis=1, keepdims=True)).astype(out_ref.dtype)


class RNNTypePallas:
    """Pallas re-implementation of RNN_type.forward (inference / eval mode)."""

    def __init__(self, vocabulary_len, batch_size, text_size, input_size,
                 hidden_size, num_layers, bidirectional=False,
                 matmul_dtype=jnp.float32, key=None):
        assert not bidirectional, "bidirectional RNN not implemented"
        self.vocabulary_len = vocabulary_len
        self.batch_size = batch_size
        self.text_size = text_size
        self.input_size = input_size
        self.hidden_size = hidden_size
        self.num_layers = num_layers
        self.matmul_dtype = matmul_dtype

        if key is None:
            key = jax.random.PRNGKey(0)
        keys = jax.random.split(key, 4 * num_layers + 5)
        kit = iter(keys)

        # Embedding: N(0,1), padding row (index = vocabulary_len) zeroed.
        emb = jax.random.normal(next(kit), (vocabulary_len + 1, input_size),
                                jnp.float32)
        self.embedding = emb.at[vocabulary_len].set(0.0)

        # RNN layers (PyTorch uniform(-1/sqrt(H), 1/sqrt(H)) init), stored
        # pre-transposed as (in_features, H) with the two biases pre-summed.
        bound = hidden_size ** -0.5
        self.rnn_params = []
        for layer in range(num_layers):
            in_f = input_size if layer == 0 else hidden_size
            w_ih = jax.random.uniform(next(kit), (hidden_size, in_f),
                                      jnp.float32, -bound, bound)
            w_hh = jax.random.uniform(next(kit), (hidden_size, hidden_size),
                                      jnp.float32, -bound, bound)
            b_ih = jax.random.uniform(next(kit), (hidden_size,),
                                      jnp.float32, -bound, bound)
            b_hh = jax.random.uniform(next(kit), (hidden_size,),
                                      jnp.float32, -bound, bound)
            self.rnn_params.append(
                (w_ih.T, w_hh.T, (b_ih + b_hh).reshape(1, hidden_size)))

        # Linear1: hidden_size -> 8.
        b1b = hidden_size ** -0.5
        w1 = jax.random.uniform(next(kit), (8, hidden_size), jnp.float32, -b1b, b1b)
        bias1 = jax.random.uniform(next(kit), (8,), jnp.float32, -b1b, b1b)
        self.w1_t, self.b1 = w1.T, bias1.reshape(1, 8)

        # Linear2: text_size*8 -> 8.
        b2b = (text_size * 8) ** -0.5
        w2 = jax.random.uniform(next(kit), (8, text_size * 8), jnp.float32,
                                -b2b, b2b)
        bias2 = jax.random.uniform(next(kit), (8,), jnp.float32, -b2b, b2b)
        self.w2_t, self.b2 = w2.T, bias2.reshape(1, 8)

        # ---- host-side eval-mode folds (feedback items 2 and 4) ----------------
        T, H = text_size, hidden_size
        w_ih0_t, w_hh0_t, b0 = self.rnn_params[0]
        with jax.default_matmul_precision("highest"):
            # Layer-0 input projection folded into the embedding table (exact:
            # gather commutes with the row-wise matmul).
            self.emb_proj = self.embedding @ w_ih0_t + b0            # (V+1, H)
            # Linear1 folded into each 8-column chunk of Linear2.
            self.w_all = jnp.concatenate(
                [self.w1_t @ self.w2_t[s * 8:(s + 1) * 8, :] for s in range(T)],
                axis=1)                                              # (H, T*8)
            w2_sum = sum(self.w2_t[s * 8:(s + 1) * 8, :] for s in range(T))
            self.b_fused = self.b2 + self.b1 @ w2_sum                # (1, 8)
        self.whh0_t = w_hh0_t

        # Constant selector matrices implementing the raw .view([B, T*8]) of the
        # time-major (T, B, 8) tensor as block MXU contractions:
        #   view row b  =  sum over flat rows r in [b*T, (b+1)*T)  using weight
        #   chunk s = r % T.
        B = batch_size
        mask = np.zeros((T * B, T * 8), np.float32)
        for r in range(T * B):
            s = r % T
            mask[r, s * 8:(s + 1) * 8] = 1.0
        sel = np.zeros((B, T * B), np.float32)
        for b in range(B):
            sel[b, b * T:(b + 1) * T] = 1.0
        csum = np.tile(np.eye(8, dtype=np.float32), (T, 1))          # (T*8, 8)
        self.view_mask = jnp.asarray(mask)
        self.view_sel = jnp.asarray(sel)
        self.chunk_sum = jnp.asarray(csum)

    @functools.partial(jax.jit, static_argnums=0)
    def __call__(self, context):
        """context: int32 (text_size, batch_size) token ids (time-major)."""
        T, B = context.shape
        assert T == self.text_size and B == self.batch_size
        H = self.hidden_size

        # Embedding gather (single XLA op); the gathered rows are already the
        # layer-0 input projection, so everything else runs in ONE Pallas kernel.
        xp0 = jnp.take(self.emb_proj, context, axis=0)                # (T, B, H)

        args = [xp0, self.whh0_t]
        for (w_ih_t, w_hh_t, b) in self.rnn_params[1:]:
            args.extend((w_ih_t, w_hh_t, b))
        args.extend((self.w_all, self.b_fused,
                     self.view_mask, self.view_sel, self.chunk_sum))

        kernel = functools.partial(_fused_forward_kernel, self.num_layers,
                                   T, B, H, self.matmul_dtype)
        return pl.pallas_call(
            kernel,
            out_shape=jax.ShapeDtypeStruct((B, 8), jnp.float32),
            in_specs=[_VMEM_SPEC] * len(args),
            out_specs=_VMEM_SPEC,
            scratch_shapes=[pltpu.VMEM((T * B, H), jnp.float32)],
            compiler_params=pltpu.CompilerParams(
                vmem_limit_bytes=32 * 1024 * 1024),
        )(*args)


def _reference_forward(model, context):
    """Pure-jnp f32 reference matching the PyTorch forward (eval mode)."""
    with jax.default_matmul_precision("highest"):
        T, B = context.shape
        x = jnp.take(model.embedding, context, axis=0)                # (T, B, I)
        layer_in = x
        for (w_ih_t, w_hh_t, b) in model.rnn_params:
            H = w_hh_t.shape[0]
            h = jnp.zeros((B, H), jnp.float32)
            outs = []
            for t in range(T):
                h = jnp.tanh(layer_in[t] @ w_ih_t + h @ w_hh_t + b)
                outs.append(h)
            layer_in = jnp.stack(outs, axis=0)                        # (T, B, H)
        y1 = layer_in.reshape(T * B, -1) @ model.w1_t + model.b1      # (T*B, 8)
        y1 = y1.reshape(B, T * 8)                                     # raw .view()
        logits = y1 @ model.w2_t + model.b2
        return jax.nn.softmax(logits, axis=1)


if __name__ == "__main__":
    VOCAB = 50
    BATCH = 4
    TEXT = 8          # sequence length
    INPUT = 16        # embedding dim
    HIDDEN = 32
    LAYERS = 2

    key = jax.random.PRNGKey(0)
    k_ctx, k_params = jax.random.split(key)

    # context: (text_size, batch_size) tokens, may include padding idx = VOCAB.
    context = jax.random.randint(k_ctx, (TEXT, BATCH), 0, VOCAB + 1, jnp.int32)

    # ---- f32 kernel: exact PyTorch (eval) semantics -----------------------------
    model_f32 = RNNTypePallas(VOCAB, BATCH, TEXT, INPUT, HIDDEN, LAYERS,
                              bidirectional=False,
                              matmul_dtype=jnp.float32, key=k_params)
    out_f32 = jax.block_until_ready(model_f32(context))
    assert out_f32.shape == (BATCH, 8), out_f32.shape

    ref = _reference_forward(model_f32, context)
    assert jnp.allclose(jnp.sum(out_f32, axis=1), 1.0, atol=1e-3)
    assert jnp.allclose(out_f32, ref, atol=5e-3), \
        float(jnp.max(jnp.abs(out_f32 - ref)))

    # ---- bf16 MXU-operand variant (v6e/v7x feedback item), same weights ---------
    model_bf16 = RNNTypePallas(VOCAB, BATCH, TEXT, INPUT, HIDDEN, LAYERS,
                               bidirectional=False,
                               matmul_dtype=jnp.bfloat16, key=k_params)
    out_bf16 = jax.block_until_ready(model_bf16(context))
    assert out_bf16.shape == (BATCH, 8), out_bf16.shape
    assert jnp.allclose(jnp.sum(out_bf16, axis=1), 1.0, atol=1e-2)
    assert jnp.allclose(out_bf16, ref, atol=5e-2), \
        float(jnp.max(jnp.abs(out_bf16 - ref)))

    print("KERNEL_OK")
</pallas_src>

<mosaic_0001>
module attributes {stable_mosaic.version = 11 : i64} {
  func.func @_fused_forward_kernel(%arg0: memref<8x4x32xf32, #tpu.memory_space<vmem>>, %arg1: memref<32x32xf32, #tpu.memory_space<vmem>>, %arg2: memref<32x32xf32, #tpu.memory_space<vmem>>, %arg3: memref<32x32xf32, #tpu.memory_space<vmem>>, %arg4: memref<1x32xf32, #tpu.memory_space<vmem>>, %arg5: memref<32x64xf32, #tpu.memory_space<vmem>>, %arg6: memref<1x8xf32, #tpu.memory_space<vmem>>, %arg7: memref<32x64xf32, #tpu.memory_space<vmem>>, %arg8: memref<4x32xf32, #tpu.memory_space<vmem>>, %arg9: memref<64x8xf32, #tpu.memory_space<vmem>>, %arg10: memref<4x8xf32, #tpu.memory_space<vmem>>, %arg11: memref<32x32xf32, #tpu.memory_space<vmem>>) attributes {dimension_semantics = [], scalar_prefetch = 0 : i64, scratch_operands = 1 : i64, tpu.core_type = #tpu.core_type<tc>} {
    %c0 = arith.constant 0 : index
    %c0_0 = arith.constant 0 : index
    %0 = vector.load %arg1[%c0, %c0_0] : memref<32x32xf32, #tpu.memory_space<vmem>>, vector<32x32xf32>
    %c0_1 = arith.constant 0 : index
    %c0_2 = arith.constant 0 : index
    %1 = vector.load %arg2[%c0_1, %c0_2] : memref<32x32xf32, #tpu.memory_space<vmem>>, vector<32x32xf32>
    %c0_3 = arith.constant 0 : index
    %c0_4 = arith.constant 0 : index
    %2 = vector.load %arg3[%c0_3, %c0_4] : memref<32x32xf32, #tpu.memory_space<vmem>>, vector<32x32xf32>
    %c0_5 = arith.constant 0 : index
    %c0_6 = arith.constant 0 : index
    %3 = vector.load %arg4[%c0_5, %c0_6] : memref<1x32xf32, #tpu.memory_space<vmem>>, vector<1x32xf32>
    %cst = arith.constant 0.000000e+00 : f32
    %4 = vector.broadcast %cst : f32 to vector<4x32xf32>
    %cst_7 = arith.constant 0.000000e+00 : f32
    %5 = vector.broadcast %cst_7 : f32 to vector<4x32xf32>
    %cst_8 = arith.constant dense<0.000000e+00> : vector<4x32xf32>
    %6 = tpu.matmul %4, %0, %cst_8 {dimension_numbers = #tpu.dot_dimension_numbers<[1], [0], [0], [1], [0, 0, 1, 1], [], []>} : vector<4x32xf32>, vector<32x32xf32>, vector<4x32xf32> -> vector<4x32xf32>
    %c0_9 = arith.constant 0 : index
    %c0_10 = arith.constant 0 : index
    %c0_11 = arith.constant 0 : index
    %7 = vector.load %arg0[%c0_9, %c0_10, %c0_11] : memref<8x4x32xf32, #tpu.memory_space<vmem>>, vector<1x4x32xf32>
    %8 = vector.shape_cast %7 : vector<1x4x32xf32> to vector<4x32xf32>
    %9 = arith.addf %8, %6 : vector<4x32xf32>
    %10 = math.tanh %9 : vector<4x32xf32>
    %cst_12 = arith.constant dense<0.000000e+00> : vector<4x32xf32>
    %11 = tpu.matmul %10, %0, %cst_12 {dimension_numbers = #tpu.dot_dimension_numbers<[1], [0], [0], [1], [0, 0, 1, 1], [], []>} : vector<4x32xf32>, vector<32x32xf32>, vector<4x32xf32> -> vector<4x32xf32>
    %c1 = arith.constant 1 : index
    %c0_13 = arith.constant 0 : index
    %c0_14 = arith.constant 0 : index
    %12 = vector.load %arg0[%c1, %c0_13, %c0_14] : memref<8x4x32xf32, #tpu.memory_space<vmem>>, vector<1x4x32xf32>
    %13 = vector.shape_cast %12 : vector<1x4x32xf32> to vector<4x32xf32>
    %14 = arith.addf %13, %11 : vector<4x32xf32>
    %15 = math.tanh %14 : vector<4x32xf32>
    %cst_15 = arith.constant dense<0.000000e+00> : vector<4x32xf32>
    %16 = tpu.matmul %5, %2, %cst_15 {dimension_numbers = #tpu.dot_dimension_numbers<[1], [0], [0], [1], [0, 0, 1, 1], [], []>} : vector<4x32xf32>, vector<32x32xf32>, vector<4x32xf32> -> vector<4x32xf32>
    %cst_16 = arith.constant dense<0.000000e+00> : vector<4x32xf32>
    %17 = tpu.matmul %10, %1, %cst_16 {dimension_numbers = #tpu.dot_dimension_numbers<[1], [0], [0], [1], [0, 0, 1, 1], [], []>} : vector<4x32xf32>, vector<32x32xf32>, vector<4x32xf32> -> vector<4x32xf32>
    %18 = arith.addf %17, %16 : vector<4x32xf32>
    %19 = vector.broadcast %3 : vector<1x32xf32> to vector<4x32xf32>
    %20 = arith.addf %18, %19 : vector<4x32xf32>
    %21 = math.tanh %20 : vector<4x32xf32>
    %c0_17 = arith.constant 0 : index
    %c0_18 = arith.constant 0 : index
    %22 = vector.load %arg11[%c0_17, %c0_18] : memref<32x32xf32, #tpu.memory_space<vmem>>, vector<4x32xf32>
    tpu.vector_store %arg11[%c0_17, %c0_18], %21 {strides = array<i32>} : memref<32x32xf32, #tpu.memory_space<vmem>>, vector<4x32xf32>,
    %cst_19 = arith.constant dense<0.000000e+00> : vector<4x32xf32>
    %23 = tpu.matmul %15, %0, %cst_19 {dimension_numbers = #tpu.dot_dimension_numbers<[1], [0], [0], [1], [0, 0, 1, 1], [], []>} : vector<4x32xf32>, vector<32x32xf32>, vector<4x32xf32> -> vector<4x32xf32>
    %c2 = arith.constant 2 : index
    %c0_20 = arith.constant 0 : index
    %c0_21 = arith.constant 0 : index
    %24 = vector.load %arg0[%c2, %c0_20, %c0_21] : memref<8x4x32xf32, #tpu.memory_space<vmem>>, vector<1x4x32xf32>
    %25 = vector.shape_cast %24 : vector<1x4x32xf32> to vector<4x32xf32>
    %26 = arith.addf %25, %23 : vector<4x32xf32>
    %27 = math.tanh %26 : vector<4x32xf32>
    %cst_22 = arith.constant dense<0.000000e+00> : vector<4x32xf32>
    %28 = tpu.matmul %21, %2, %cst_22 {dimension_numbers = #tpu.dot_dimension_numbers<[1], [0], [0], [1], [0, 0, 1, 1], [], []>} : vector<4x32xf32>, vector<32x32xf32>, vector<4x32xf32> -> vector<4x32xf32>
    %cst_23 = arith.constant dense<0.000000e+00> : vector<4x32xf32>
    %29 = tpu.matmul %15, %1, %cst_23 {dimension_numbers = #tpu.dot_dimension_numbers<[1], [0], [0], [1], [0, 0, 1, 1], [], []>} : vector<4x32xf32>, vector<32x32xf32>, vector<4x32xf32> -> vector<4x32xf32>
    %30 = arith.addf %29, %28 : vector<4x32xf32>
    %31 = vector.broadcast %3 : vector<1x32xf32> to vector<4x32xf32>
    %32 = arith.addf %30, %31 : vector<4x32xf32>
    %33 = math.tanh %32 : vector<4x32xf32>
    %c4 = arith.constant 4 : index
    %c0_24 = arith.constant 0 : index
    %34 = vector.load %arg11[%c4, %c0_24] : memref<32x32xf32, #tpu.memory_space<vmem>>, vector<4x32xf32>
    tpu.vector_store %arg11[%c4, %c0_24], %33 {strides = array<i32>} : memref<32x32xf32, #tpu.memory_space<vmem>>, vector<4x32xf32>,
    %cst_25 = arith.constant dense<0.000000e+00> : vector<4x32xf32>
    %35 = tpu.matmul %27, %0, %cst_25 {dimension_numbers = #tpu.dot_dimension_numbers<[1], [0], [0], [1], [0, 0, 1, 1], [], []>} : vector<4x32xf32>, vector<32x32xf32>, vector<4x32xf32> -> vector<4x32xf32>
    %c3 = arith.constant 3 : index
    %c0_26 = arith.constant 0 : index
    %c0_27 = arith.constant 0 : index
    %36 = vector.load %arg0[%c3, %c0_26, %c0_27] : memref<8x4x32xf32, #tpu.memory_space<vmem>>, vector<1x4x32xf32>
    %37 = vector.shape_cast %36 : vector<1x4x32xf32> to vector<4x32xf32>
    %38 = arith.addf %37, %35 : vector<4x32xf32>
    %39 = math.tanh %38 : vector<4x32xf32>
    %cst_28 = arith.constant dense<0.000000e+00> : vector<4x32xf32>
    %40 = tpu.matmul %33, %2, %cst_28 {dimension_numbers = #tpu.dot_dimension_numbers<[1], [0], [0], [1], [0, 0, 1, 1], [], []>} : vector<4x32xf32>, vector<32x32xf32>, vector<4x32xf32> -> vector<4x32xf32>
    %cst_29 = arith.constant dense<0.000000e+00> : vector<4x32xf32>
    %41 = tpu.matmul %27, %1, %cst_29 {dimension_numbers = #tpu.dot_dimension_numbers<[1], [0], [0], [1], [0, 0, 1, 1], [], []>} : vector<4x32xf32>, vector<32x32xf32>, vector<4x32xf32> -> vector<4x32xf32>
    %42 = arith.addf %41, %40 : vector<4x32xf32>
    %43 = vector.broadcast %3 : vector<1x32xf32> to vector<4x32xf32>
    %44 = arith.addf %42, %43 : vector<4x32xf32>
    %45 = math.tanh %44 : vector<4x32xf32>
    %c8 = arith.constant 8 : index
    %c0_30 = arith.constant 0 : index
    %46 = vector.load %arg11[%c8, %c0_30] : memref<32x32xf32, #tpu.memory_space<vmem>>, vector<4x32xf32>
    tpu.vector_store %arg11[%c8, %c0_30], %45 {strides = array<i32>} : memref<32x32xf32, #tpu.memory_space<vmem>>, vector<4x32xf32>,
    %cst_31 = arith.constant dense<0.000000e+00> : vector<4x32xf32>
    %47 = tpu.matmul %39, %0, %cst_31 {dimension_numbers = #tpu.dot_dimension_numbers<[1], [0], [0], [1], [0, 0, 1, 1], [], []>} : vector<4x32xf32>, vector<32x32xf32>, vector<4x32xf32> -> vector<4x32xf32>
    %c4_32 = arith.constant 4 : index
    %c0_33 = arith.constant 0 : index
    %c0_34 = arith.constant 0 : index
    %48 = vector.load %arg0[%c4_32, %c0_33, %c0_34] : memref<8x4x32xf32, #tpu.memory_space<vmem>>, vector<1x4x32xf32>
    %49 = vector.shape_cast %48 : vector<1x4x32xf32> to vector<4x32xf32>
    %50 = arith.addf %49, %47 : vector<4x32xf32>
    %51 = math.tanh %50 : vector<4x32xf32>
    %cst_35 = arith.constant dense<0.000000e+00> : vector<4x32xf32>
    %52 = tpu.matmul %45, %2, %cst_35 {dimension_numbers = #tpu.dot_dimension_numbers<[1], [0], [0], [1], [0, 0, 1, 1], [], []>} : vector<4x32xf32>, vector<32x32xf32>, vector<4x32xf32> -> vector<4x32xf32>
    %cst_36 = arith.constant dense<0.000000e+00> : vector<4x32xf32>
    %53 = tpu.matmul %39, %1, %cst_36 {dimension_numbers = #tpu.dot_dimension_numbers<[1], [0], [0], [1], [0, 0, 1, 1], [], []>} : vector<4x32xf32>, vector<32x32xf32>, vector<4x32xf32> -> vector<4x32xf32>
    %54 = arith.addf %53, %52 : vector<4x32xf32>
    %55 = vector.broadcast %3 : vector<1x32xf32> to vector<4x32xf32>
    %56 = arith.addf %54, %55 : vector<4x32xf32>
    %57 = math.tanh %56 : vector<4x32xf32>
    %c12 = arith.constant 12 : index
    %c0_37 = arith.constant 0 : index
    %58 = vector.load %arg11[%c12, %c0_37] : memref<32x32xf32, #tpu.memory_space<vmem>>, vector<4x32xf32>
    tpu.vector_store %arg11[%c12, %c0_37], %57 {strides = array<i32>} : memref<32x32xf32, #tpu.memory_space<vmem>>, vector<4x32xf32>,
    %cst_38 = arith.constant dense<0.000000e+00> : vector<4x32xf32>
    %59 = tpu.matmul %51, %0, %cst_38 {dimension_numbers = #tpu.dot_dimension_numbers<[1], [0], [0], [1], [0, 0, 1, 1], [], []>} : vector<4x32xf32>, vector<32x32xf32>, vector<4x32xf32> -> vector<4x32xf32>
    %c5 = arith.constant 5 : index
    %c0_39 = arith.constant 0 : index
    %c0_40 = arith.constant 0 : index
    %60 = vector.load %arg0[%c5, %c0_39, %c0_40] : memref<8x4x32xf32, #tpu.memory_space<vmem>>, vector<1x4x32xf32>
    %61 = vector.shape_cast %60 : vector<1x4x32xf32> to vector<4x32xf32>
    %62 = arith.addf %61, %59 : vector<4x32xf32>
    %63 = math.tanh %62 : vector<4x32xf32>
    %cst_41 = arith.constant dense<0.000000e+00> : vector<4x32xf32>
    %64 = tpu.matmul %57, %2, %cst_41 {dimension_numbers = #tpu.dot_dimension_numbers<[1], [0], [0], [1], [0, 0, 1, 1], [], []>} : vector<4x32xf32>, vector<32x32xf32>, vector<4x32xf32> -> vector<4x32xf32>
    %cst_42 = arith.constant dense<0.000000e+00> : vector<4x32xf32>
    %65 = tpu.matmul %51, %1, %cst_42 {dimension_numbers = #tpu.dot_dimension_numbers<[1], [0], [0], [1], [0, 0, 1, 1], [], []>} : vector<4x32xf32>, vector<32x32xf32>, vector<4x32xf32> -> vector<4x32xf32>
    %66 = arith.addf %65, %64 : vector<4x32xf32>
    %67 = vector.broadcast %3 : vector<1x32xf32> to vector<4x32xf32>
    %68 = arith.addf %66, %67 : vector<4x32xf32>
    %69 = math.tanh %68 : vector<4x32xf32>
    %c16 = arith.constant 16 : index
    %c0_43 = arith.constant 0 : index
    %70 = vector.load %arg11[%c16, %c0_43] : memref<32x32xf32, #tpu.memory_space<vmem>>, vector<4x32xf32>
    tpu.vector_store %arg11[%c16, %c0_43], %69 {strides = array<i32>} : memref<32x32xf32, #tpu.memory_space<vmem>>, vector<4x32xf32>,
    %cst_44 = arith.constant dense<0.000000e+00> : vector<4x32xf32>
    %71 = tpu.matmul %63, %0, %cst_44 {dimension_numbers = #tpu.dot_dimension_numbers<[1], [0], [0], [1], [0, 0, 1, 1], [], []>} : vector<4x32xf32>, vector<32x32xf32>, vector<4x32xf32> -> vector<4x32xf32>
    %c6 = arith.constant 6 : index
    %c0_45 = arith.constant 0 : index
    %c0_46 = arith.constant 0 : index
    %72 = vector.load %arg0[%c6, %c0_45, %c0_46] : memref<8x4x32xf32, #tpu.memory_space<vmem>>, vector<1x4x32xf32>
    %73 = vector.shape_cast %72 : vector<1x4x32xf32> to vector<4x32xf32>
    %74 = arith.addf %73, %71 : vector<4x32xf32>
    %75 = math.tanh %74 : vector<4x32xf32>
    %cst_47 = arith.constant dense<0.000000e+00> : vector<4x32xf32>
    %76 = tpu.matmul %69, %2, %cst_47 {dimension_numbers = #tpu.dot_dimension_numbers<[1], [0], [0], [1], [0, 0, 1, 1], [], []>} : vector<4x32xf32>, vector<32x32xf32>, vector<4x32xf32> -> vector<4x32xf32>
    %cst_48 = arith.constant dense<0.000000e+00> : vector<4x32xf32>
    %77 = tpu.matmul %63, %1, %cst_48 {dimension_numbers = #tpu.dot_dimension_numbers<[1], [0], [0], [1], [0, 0, 1, 1], [], []>} : vector<4x32xf32>, vector<32x32xf32>, vector<4x32xf32> -> vector<4x32xf32>
    %78 = arith.addf %77, %76 : vector<4x32xf32>
    %79 = vector.broadcast %3 : vector<1x32xf32> to vector<4x32xf32>
    %80 = arith.addf %78, %79 : vector<4x32xf32>
    %81 = math.tanh %80 : vector<4x32xf32>
    %c20 = arith.constant 20 : index
    %c0_49 = arith.constant 0 : index
    %82 = vector.load %arg11[%c20, %c0_49] : memref<32x32xf32, #tpu.memory_space<vmem>>, vector<4x32xf32>
    tpu.vector_store %arg11[%c20, %c0_49], %81 {strides = array<i32>} : memref<32x32xf32, #tpu.memory_space<vmem>>, vector<4x32xf32>,
    %cst_50 = arith.constant dense<0.000000e+00> : vector<4x32xf32>
    %83 = tpu.matmul %75, %0, %cst_50 {dimension_numbers = #tpu.dot_dimension_numbers<[1], [0], [0], [1], [0, 0, 1, 1], [], []>} : vector<4x32xf32>, vector<32x32xf32>, vector<4x32xf32> -> vector<4x32xf32>
    %c7 = arith.constant 7 : index
    %c0_51 = arith.constant 0 : index
    %c0_52 = arith.constant 0 : index
    %84 = vector.load %arg0[%c7, %c0_51, %c0_52] : memref<8x4x32xf32, #tpu.memory_space<vmem>>, vector<1x4x32xf32>
    %85 = vector.shape_cast %84 : vector<1x4x32xf32> to vector<4x32xf32>
    %86 = arith.addf %85, %83 : vector<4x32xf32>
    %87 = math.tanh %86 : vector<4x32xf32>
    %cst_53 = arith.constant dense<0.000000e+00> : vector<4x32xf32>
    %88 = tpu.matmul %81, %2, %cst_53 {dimension_numbers = #tpu.dot_dimension_numbers<[1], [0], [0], [1], [0, 0, 1, 1], [], []>} : vector<4x32xf32>, vector<32x32xf32>, vector<4x32xf32> -> vector<4x32xf32>
    %cst_54 = arith.constant dense<0.000000e+00> : vector<4x32xf32>
    %89 = tpu.matmul %75, %1, %cst_54 {dimension_numbers = #tpu.dot_dimension_numbers<[1], [0], [0], [1], [0, 0, 1, 1], [], []>} : vector<4x32xf32>, vector<32x32xf32>, vector<4x32xf32> -> vector<4x32xf32>
    %90 = arith.addf %89, %88 : vector<4x32xf32>
    %91 = vector.broadcast %3 : vector<1x32xf32> to vector<4x32xf32>
    %92 = arith.addf %90, %91 : vector<4x32xf32>
    %93 = math.tanh %92 : vector<4x32xf32>
    %c24 = arith.constant 24 : index
    %c0_55 = arith.constant 0 : index
    %94 = vector.load %arg11[%c24, %c0_55] : memref<32x32xf32, #tpu.memory_space<vmem>>, vector<4x32xf32>
    tpu.vector_store %arg11[%c24, %c0_55], %93 {strides = array<i32>} : memref<32x32xf32, #tpu.memory_space<vmem>>, vector<4x32xf32>,
    %cst_56 = arith.constant dense<0.000000e+00> : vector<4x32xf32>
    %95 = tpu.matmul %93, %2, %cst_56 {dimension_numbers = #tpu.dot_dimension_numbers<[1], [0], [0], [1], [0, 0, 1, 1], [], []>} : vector<4x32xf32>, vector<32x32xf32>, vector<4x32xf32> -> vector<4x32xf32>
    %cst_57 = arith.constant dense<0.000000e+00> : vector<4x32xf32>
    %96 = tpu.matmul %87, %1, %cst_57 {dimension_numbers = #tpu.dot_dimension_numbers<[1], [0], [0], [1], [0, 0, 1, 1], [], []>} : vector<4x32xf32>, vector<32x32xf32>, vector<4x32xf32> -> vector<4x32xf32>
    %97 = arith.addf %96, %95 : vector<4x32xf32>
    %98 = vector.broadcast %3 : vector<1x32xf32> to vector<4x32xf32>
    %99 = arith.addf %97, %98 : vector<4x32xf32>
    %100 = math.tanh %99 : vector<4x32xf32>
    %c28 = arith.constant 28 : index
    %c0_58 = arith.constant 0 : index
    %101 = vector.load %arg11[%c28, %c0_58] : memref<32x32xf32, #tpu.memory_space<vmem>>, vector<4x32xf32>
    tpu.vector_store %arg11[%c28, %c0_58], %100 {strides = array<i32>} : memref<32x32xf32, #tpu.memory_space<vmem>>, vector<4x32xf32>,
    %c0_59 = arith.constant 0 : index
    %c0_60 = arith.constant 0 : index
    %102 = vector.load %arg11[%c0_59, %c0_60] : memref<32x32xf32, #tpu.memory_space<vmem>>, vector<32x32xf32>
    %c0_61 = arith.constant 0 : index
    %c0_62 = arith.constant 0 : index
    %103 = vector.load %arg5[%c0_61, %c0_62] : memref<32x64xf32, #tpu.memory_space<vmem>>, vector<32x64xf32>
    %cst_63 = arith.constant dense<0.000000e+00> : vector<32x64xf32>
    %104 = tpu.matmul %102, %103, %cst_63 {dimension_numbers = #tpu.dot_dimension_numbers<[1], [0], [0], [1], [0, 0, 1, 1], [], []>} : vector<32x32xf32>, vector<32x64xf32>, vector<32x64xf32> -> vector<32x64xf32>
    %c0_64 = arith.constant 0 : index
    %c0_65 = arith.constant 0 : index
    %105 = vector.load %arg7[%c0_64, %c0_65] : memref<32x64xf32, #tpu.memory_space<vmem>>, vector<32x64xf32>
    %106 = arith.mulf %104, %105 : vector<32x64xf32>
    %c0_66 = arith.constant 0 : index
    %c0_67 = arith.constant 0 : index
    %107 = vector.load %arg8[%c0_66, %c0_67] : memref<4x32xf32, #tpu.memory_space<vmem>>, vector<4x32xf32>
    %cst_68 = arith.constant dense<0.000000e+00> : vector<4x64xf32>
    %108 = tpu.matmul %107, %106, %cst_68 {dimension_numbers = #tpu.dot_dimension_numbers<[1], [0], [0], [1], [0, 0, 1, 1], [], []>} : vector<4x32xf32>, vector<32x64xf32>, vector<4x64xf32> -> vector<4x64xf32>
    %c0_69 = arith.constant 0 : index
    %c0_70 = arith.constant 0 : index
    %109 = vector.load %arg9[%c0_69, %c0_70] : memref<64x8xf32, #tpu.memory_space<vmem>>, vector<64x8xf32>
    %cst_71 = arith.constant dense<0.000000e+00> : vector<4x8xf32>
    %110 = tpu.matmul %108, %109, %cst_71 {dimension_numbers = #tpu.dot_dimension_numbers<[1], [0], [0], [1], [0, 0, 1, 1], [], []>} : vector<4x64xf32>, vector<64x8xf32>, vector<4x8xf32> -> vector<4x8xf32>
    %c0_72 = arith.constant 0 : index
    %c0_73 = arith.constant 0 : index
    %111 = vector.load %arg6[%c0_72, %c0_73] : memref<1x8xf32, #tpu.memory_space<vmem>>, vector<1x8xf32>
    %112 = vector.broadcast %111 : vector<1x8xf32> to vector<4x8xf32>
    %113 = arith.addf %110, %112 : vector<4x8xf32>
    %cst_74 = arith.constant dense<0xFF800000> : vector<4xf32>
    %114 = vector.multi_reduction <maximumf>, %113, %cst_74 [1] : vector<4x8xf32> to vector<4xf32>
    %115 = vector.shape_cast %114 : vector<4xf32> to vector<4x1xf32>
    %116 = vector.broadcast %115 : vector<4x1xf32> to vector<4x8xf32>
    %117 = arith.subf %113, %116 : vector<4x8xf32>
    %118 = math.exp %117 : vector<4x8xf32>
    %cst_75 = arith.constant dense<0.000000e+00> : vector<4xf32>
    %119 = vector.multi_reduction <add>, %118, %cst_75 [1] : vector<4x8xf32> to vector<4xf32>
    %120 = vector.shape_cast %119 : vector<4xf32> to vector<4x1xf32>
    %121 = vector.broadcast %120 : vector<4x1xf32> to vector<4x8xf32>
    %122 = arith.divf %118, %121 : vector<4x8xf32>
    %c0_76 = arith.constant 0 : index
    %c0_77 = arith.constant 0 : index
    %123 = vector.load %arg10[%c0_76, %c0_77] : memref<4x8xf32, #tpu.memory_space<vmem>>, vector<4x8xf32>
    tpu.vector_store %arg10[%c0_76, %c0_77], %122 {strides = array<i32>} : memref<4x8xf32, #tpu.memory_space<vmem>>, vector<4x8xf32>,
    return
  }
}

</mosaic_0001>

<bundles_post_ra>
// kernel: a_call__.1
= control target key start
LH: loop header
LB: loop body
LE: loop exit
PB: predicated region body
PF: predicated region fallthrough
CT: control target
= control target key end

     0   :  { %v2864_v3 = vmov 0.0|0.0   ;;  %vm2865_vm0 = vmmov 0   ;;  %v2866_v6 = vmov 0.0   ;;  %s3268_s0 = inlined_call_operand.vmem [shape: f32[8,4,32], index: 0, kind: input, shape index: {}]   ;;  %s3269_s1 = inlined_call_operand.vmem [shape: f32[32,32], index: 1, kind: input, shape index: {}]   ;;  %s3270_s2 = inlined_call_operand.vmem [shape: f32[32,32], index: 2, kind: input, shape index: {}]   ;;  %s3271_s3 = inlined_call_operand.vmem [shape: f32[32,32], index: 3, kind: input, shape index: {}]   ;;  %s3272_s4 = inlined_call_operand.vmem [shape: f32[1,32], index: 4, kind: input, shape index: {}]   ;;  %s3273_s5 = inlined_call_operand.vmem [shape: f32[32,64], index: 5, kind: input, shape index: {}]   ;;  %s3274_s6 = inlined_call_operand.vmem [shape: f32[1,8], index: 6, kind: input, shape index: {}]   ;;  %s3275_s7 = inlined_call_operand.vmem [shape: f32[32,64], index: 7, kind: input, shape index: {}]   ;;  %s3276_s8 = inlined_call_operand.vmem [shape: f32[4,32], index: 8, kind: input, shape index: {}]   ;;  %s3277_s9 = inlined_call_operand.vmem [shape: f32[64,8], index: 9, kind: input, shape index: {}]   ;;  %s3278_s10 = inlined_call_operand.hbm [shape: f32[4,8], index: 10, kind: output, shape index: {}]  }
   0x1   :  { %v36_v0 = vld [vmem:[%s3269_s1] sm:$0xff]  ;;  %v37_v1 = vld [vmem:[%s3269_s1 + $0x8] sm:$0xff]  ;;  %v38_v2 = vld [vmem:[%s3269_s1 + $0x10] sm:$0xff]  ;;  %2630 = vmatprep.subr.bf16.mxu1 %v2864_v3  ;;  %2330 = vmatprep.mubr.msk.f32.mxu1 %vm2865_vm0, %v2866_v6 }
   0x2   :  { %v2933_v4 = vpack.c.bf16 %v37_v1, %v36_v0  ;;  %v39_v5 = vld [vmem:[%s3269_s1 + $0x18] sm:$0xff] }
   0x3   :  { %15 = vsyncpa [#allocation4], 0  ;;  %2642 = vmatprep.subr.bf16.mxu0 %v2864_v3  ;;  %2352 = vmatprep.mubr.msk.f32.mxu0 %vm2865_vm0, %v2866_v6  ;;  %v2944_v7 = vpack.c.bf16 %v39_v5, %v38_v2  ;;  %v44_v8 = vld [vmem:[%s3271_s3] sm:$0xff]  ;;  %v45_v9 = vld [vmem:[%s3271_s3 + $0x8] sm:$0xff]  ;;  %vm49_vm1 = vcmask 261120   ;;  %vm351_vm2 = vcmask 257024  }
   0x4   :  { %2632 = vmatpush3.bf16.msra.mxu1 %v2933_v4  ;;  %v2962_v10 = vpack.c.bf16 %v45_v9, %v44_v8  ;;  %v46_v11 = vld [vmem:[%s3271_s3 + $0x10] sm:$0xff]  ;;  %v47_v12 = vld [vmem:[%s3271_s3 + $0x18] sm:$0xff]  ;;  %v123_v14 = vld [vmem:[%s3268_s0] sm:$0xf]  ;;  %vm2042_vm3 = vcmask 523264   ;;  %vm2116_vm4 = vcmask 60416  }
   0x5   :  { %2633 = vmatprep.subr.bf16.mxu1 %v2864_v3  ;;  %v2972_v13 = vpack.c.bf16 %v47_v12, %v46_v11  ;;  %v40_v18 = vld [vmem:[%s3270_s2] sm:$0xff]  ;;  %v41_v19 = vld [vmem:[%s3270_s2 + $0x8] sm:$0xff]  ;;  %v42_v21 = vld [vmem:[%s3270_s2 + $0x10] sm:$0xff] }
   0x6   :  { %2644 = vmatpush3.bf16.msra.mxu0 %v2962_v10  ;;  %v2992_v20 = vpack.c.bf16 %v41_v19, %v40_v18  ;;  %v43_v22 = vld [vmem:[%s3270_s2 + $0x18] sm:$0xff]  ;;  %v2144_v27 = vld [vmem:[%s3268_s0 + $0x4] sm:$0xf]  ;;  %v3022_v31 = vld [vmem:[%s3272_s4] ss:$0 sm:$0xff] }
   0x7   :  { %2645 = vmatprep.subr.bf16.mxu0 %v2864_v3  ;;  %v3002_v24 = vpack.c.bf16 %v43_v22, %v42_v21  ;;  %v2148_v38 = vld [vmem:[%s3268_s0 + $0x8] sm:$0xf]  ;;  %v2152_v50 = vld [vmem:[%s3268_s0 + $0xc] sm:$0xf]  ;;  %v2156_v62 = vld [vmem:[%s3268_s0 + $0x10] sm:$0xf] }
   0x8   :  { %2635 = vmatpush3.bf16.msra.mxu1 %v2944_v7 }
   0x9   :  { %2636 = vmatprep.subr.bf16.mxu1 %v2864_v3 }
   0xa   :  { %2647 = vmatpush3.bf16.msra.mxu0 %v2972_v13 }
   0xb   :  { %2331 = vmatmul.mubr.f32.vlgmr.msra.gmra.mrb[0].mxu1 %v2866_v6  ;;  %2654 = vmatprep.subr.bf16.mxu0 %v2864_v3 }
   0xc   :  { %2638 = vmatpush3.bf16.msra.mxu1 %v2933_v4  ;;  %2341 = vmatprep.mubr.msk.f32.mxu1 %vm2865_vm0, %v2866_v6 }
   0xd   :  { %2639 = vmatprep.subr.bf16.mxu1 %v2864_v3  ;;  %2353 = vmatmul.mubr.f32.vlgmr.msra.gmra.mrb[0].mxu0 %v2866_v6 }
   0xe   :  { %2656 = vmatpush3.bf16.msra.mxu0 %v2933_v4  ;;  %2374 = vmatprep.mubr.msk.f32.mxu0 %vm2865_vm0, %v2866_v6 }
   0xf   :  { %2657 = vmatprep.subr.bf16.mxu0 %v2864_v3 }
  0x10   :  { %2641 = vmatpush3.bf16.msra.mxu1 %v2944_v7 }
  0x11   :  { %2648 = vmatprep.subr.bf16.mxu1 %v2864_v3 }
  0x12   :  { %2659 = vmatpush3.bf16.msra.mxu0 %v2944_v7 }
  0x13   :  { %2666 = vmatprep.subr.bf16.mxu0 %v2864_v3 }
  0xde   :  { %v119_v15 = vpop.f32.mrb[0].mxu1 }
  0xdf   :  { %v124_v16 = vadd.f32 %v123_v14, %v119_v15  ;;  %v2332_v17 = vpop.f32.mrb[1].mxu1 }
  0xe0   :  { %v269_v25 = vpop.f32.mrb[0].mxu0 }
  0xe1   :  { %2804 = vtanh.f32 %v124_v16  ;;  %v2354_v26 = vpop.f32.mrb[1].mxu0  ;;  %v2160_v16 = vld [vmem:[%s3268_s0 + $0x14] sm:$0xf] }
  0xeb   :  { %v2805_v23 = vpop.eup %2804 }
  0xec   :  { %2342 = vmatmul.mubr.msk.f32.vlgmr.msra.gmra.mrb[2].mxu1 %vm49_vm1, %v2805_v23 }
  0xed   :  { %2650 = vmatpush3.bf16.msra.mxu1 %v2992_v20  ;;  %2363 = vmatprep.mubr.msk.f32.mxu1 %vm2865_vm0, %v2866_v6 }
  0xee   :  { %2651 = vmatprep.subr.bf16.mxu1 %v2864_v3 }
  0xf1   :  { %2653 = vmatpush3.bf16.msra.mxu1 %v3002_v24 }
  0xf2   :  { %2660 = vmatprep.subr.bf16.mxu1 %v2864_v3 }
  0xf4   :  { %2364 = vmatmul.mubr.msk.f32.vlgmr.msra.gmra.mrb[4].mxu1 %vm49_vm1, %v2805_v23 }
  0xf5   :  { %2662 = vmatpush3.bf16.msra.mxu1 %v2962_v10  ;;  %2385 = vmatprep.mubr.msk.f32.mxu1 %vm2865_vm0, %v2866_v6 }
  0xf6   :  { %2663 = vmatprep.subr.bf16.mxu1 %v2864_v3 }
  0xf9   :  { %2665 = vmatpush3.bf16.msra.mxu1 %v2972_v13 }
  0xfa   :  { %2672 = vmatprep.subr.bf16.mxu1 %v2864_v3 }
 0x1bf   :  { %v195_v28 = vpop.f32.mrb[2].mxu1 }
 0x1c0   :  { %v201_v29 = vadd.f32 %v2144_v27, %v195_v28  ;;  %v2343_v30 = vpop.f32.mrb[3].mxu1 }
 0x1c1   :  { %v2164_v30 = vld [vmem:[%s3268_s0 + $0x18] sm:$0xf] }
 0x1c2   :  { %2806 = vtanh.f32 %v201_v29 }
 0x1c7   :  { %v339_v32 = vpop.f32.mrb[4].mxu1 }
 0x1c8   :  { %v340_v33 = vadd.f32 %v339_v32, %v269_v25  ;;  %v2365_v34 = vpop.f32.mrb[5].mxu1 }
 0x1ca   :  { %v349_v35 = vadd.f32 %v3022_v31, %v340_v33 }
 0x1cc   :  { %v2807_v36 = vpop.eup %2806  ;;  %2808 = vtanh.f32 %v349_v35 }
 0x1cd   :  { %2375 = vmatmul.mubr.msk.f32.vlgmr.msra.gmra.mrb[2].mxu0 %vm49_vm1, %v2807_v36 }
 0x1ce   :  { %2668 = vmatpush3.bf16.msra.mxu0 %v2992_v20  ;;  %2396 = vmatprep.mubr.msk.f32.mxu0 %vm2865_vm0, %v2866_v6 }
 0x1cf   :  { %2669 = vmatprep.subr.bf16.mxu0 %v2864_v3 }
 0x1d2   :  { %2671 = vmatpush3.bf16.msra.mxu0 %v3002_v24 }
 0x1d3   :  { %2678 = vmatprep.subr.bf16.mxu0 %v2864_v3 }
 0x1d5   :  { %2397 = vmatmul.mubr.msk.f32.vlgmr.msra.gmra.mrb[4].mxu0 %vm49_vm1, %v2807_v36 }
 0x1d6   :  { %v2809_v37 = vpop.eup %2808  ;;  %2680 = vmatpush3.bf16.msra.mxu0 %v2962_v10  ;;  %2418 = vmatprep.mubr.msk.f32.mxu0 %vm2865_vm0, %v2866_v6 }
 0x1d7   :  { %352 = vst.msk [vmem:[#allocation2] sm:$0xf] %vm351_vm2, %v2809_v37  ;;  %2386 = vmatmul.mubr.msk.f32.vlgmr.msra.gmra.mrb[6].mxu1 %vm49_vm1, %v2809_v37  ;;  %2681 = vmatprep.subr.bf16.mxu0 %v2864_v3 }
 0x1d8   :  { %2674 = vmatpush3.bf16.msra.mxu1 %v2933_v4  ;;  %2407 = vmatprep.mubr.msk.f32.mxu1 %vm2865_vm0, %v2866_v6 }
 0x1d9   :  { %2675 = vmatprep.subr.bf16.mxu1 %v2864_v3 }
 0x1da   :  { %2683 = vmatpush3.bf16.msra.mxu0 %v2972_v13 }
 0x1db   :  { %2690 = vmatprep.subr.bf16.mxu0 %v2864_v3 }
 0x1dc   :  { %2677 = vmatpush3.bf16.msra.mxu1 %v2944_v7 }
 0x1dd   :  { %2684 = vmatprep.subr.bf16.mxu1 %v2864_v3 }
 0x2a0   :  { %v422_v39 = vpop.f32.mrb[2].mxu0 }
 0x2a1   :  { %v428_v40 = vadd.f32 %v2148_v38, %v422_v39  ;;  %v2376_v41 = vpop.f32.mrb[3].mxu0 }
 0x2a3   :  { %2810 = vtanh.f32 %v428_v40 }
 0x2a8   :  { %v569_v42 = vpop.f32.mrb[4].mxu0 }
 0x2a9   :  { %v2398_v43 = vpop.f32.mrb[5].mxu0 }
 0x2aa   :  { %v499_v44 = vpop.f32.mrb[6].mxu1 }
 0x2ab   :  { %v570_v45 = vadd.f32 %v569_v42, %v499_v44  ;;  %v2387_v46 = vpop.f32.mrb[7].mxu1 }
 0x2ad   :  { %v2811_v47 = vpop.eup %2810  ;;  %v573_v48 = vadd.f32 %v3022_v31, %v570_v45 }
 0x2ae   :  { %2408 = vmatmul.mubr.msk.f32.vlgmr.msra.gmra.mrb[8].mxu1 %vm49_vm1, %v2811_v47 }
 0x2af   :  { %2812 = vtanh.f32 %v573_v48  ;;  %2686 = vmatpush3.bf16.msra.mxu1 %v2992_v20  ;;  %2429 = vmatprep.mubr.msk.f32.mxu1 %vm2865_vm0, %v2866_v6 }
 0x2b0   :  { %2687 = vmatprep.subr.bf16.mxu1 %v2864_v3 }
 0x2b3   :  { %2689 = vmatpush3.bf16.msra.mxu1 %v3002_v24 }
 0x2b4   :  { %2696 = vmatprep.subr.bf16.mxu1 %v2864_v3 }
 0x2b6   :  { %2430 = vmatmul.mubr.msk.f32.vlgmr.msra.gmra.mrb[10].mxu1 %vm49_vm1, %v2811_v47 }
 0x2b7   :  { %2698 = vmatpush3.bf16.msra.mxu1 %v2962_v10  ;;  %2451 = vmatprep.mubr.msk.f32.mxu1 %vm2865_vm0, %v2866_v6 }
 0x2b8   :  { %2699 = vmatprep.subr.bf16.mxu1 %v2864_v3 }
 0x2b9   :  { %v2813_v49 = vpop.eup %2812 }
 0x2ba   :  { %575 = vst.msk [vmem:[#allocation2 + $0x4] sm:$0xf] %vm351_vm2, %v2813_v49  ;;  %2419 = vmatmul.mubr.msk.f32.vlgmr.msra.gmra.mrb[6].mxu0 %vm49_vm1, %v2813_v49 }
 0x2bb   :  { %2692 = vmatpush3.bf16.msra.mxu0 %v2933_v4  ;;  %2440 = vmatprep.mubr.msk.f32.mxu0 %vm2865_vm0, %v2866_v6 }
 0x2bc   :  { %2693 = vmatprep.subr.bf16.mxu0 %v2864_v3  ;;  %2701 = vmatpush3.bf16.msra.mxu1 %v2972_v13 }
 0x2bd   :  { %2708 = vmatprep.subr.bf16.mxu1 %v2864_v3 }
 0x2bf   :  { %2695 = vmatpush3.bf16.msra.mxu0 %v2944_v7 }
 0x2c0   :  { %2702 = vmatprep.subr.bf16.mxu0 %v2864_v3 }
 0x381   :  { %v645_v51 = vpop.f32.mrb[8].mxu1 }
 0x382   :  { %v651_v52 = vadd.f32 %v2152_v50, %v645_v51  ;;  %v2409_v53 = vpop.f32.mrb[9].mxu1  ;;  %v1846_v51 = vld [vmem:[%s3273_s5 + $0x10] sm:$0xff] }
 0x384   :  { %2814 = vtanh.f32 %v651_v52  ;;  %v1847_v52 = vld [vmem:[%s3273_s5 + $0x18] sm:$0xff] }
 0x385   :  { %v2778_v53 = vpack.c.bf16 %v1847_v52, %v1846_v51 }
 0x389   :  { %v792_v54 = vpop.f32.mrb[10].mxu1 }
 0x38a   :  { %v2431_v55 = vpop.f32.mrb[11].mxu1 }
 0x38b   :  { %v1840_v55 = vld [vmem:[#allocation2] sm:$0xff] }
 0x38d   :  { %v722_v56 = vpop.f32.mrb[6].mxu0 }
 0x38e   :  { %v2815_v57 = vpop.eup %2814  ;;  %v793_v58 = vadd.f32 %v792_v54, %v722_v56  ;;  %v2420_v59 = vpop.f32.mrb[7].mxu0 }
 0x38f   :  { %2441 = vmatmul.mubr.msk.f32.vlgmr.msra.gmra.mrb[8].mxu0 %vm49_vm1, %v2815_v57 }
 0x390   :  { %v796_v60 = vadd.f32 %v3022_v31, %v793_v58  ;;  %2704 = vmatpush3.bf16.msra.mxu0 %v2992_v20  ;;  %2462 = vmatprep.mubr.msk.f32.mxu0 %vm2865_vm0, %v2866_v6 }
 0x391   :  { %2705 = vmatprep.subr.bf16.mxu0 %v2864_v3 }
 0x392   :  { %2816 = vtanh.f32 %v796_v60 }
 0x394   :  { %2707 = vmatpush3.bf16.msra.mxu0 %v3002_v24 }
 0x395   :  { %2714 = vmatprep.subr.bf16.mxu0 %v2864_v3 }
 0x397   :  { %2463 = vmatmul.mubr.msk.f32.vlgmr.msra.gmra.mrb[10].mxu0 %vm49_vm1, %v2815_v57 }
 0x398   :  { %2716 = vmatpush3.bf16.msra.mxu0 %v2962_v10  ;;  %2484 = vmatprep.mubr.msk.f32.mxu0 %vm2865_vm0, %v2866_v6 }
 0x399   :  { %2717 = vmatprep.subr.bf16.mxu0 %v2864_v3 }
 0x39c   :  { %v2817_v61 = vpop.eup %2816  ;;  %2719 = vmatpush3.bf16.msra.mxu0 %v2972_v13 }
 0x39d   :  { %798 = vst.msk [vmem:[#allocation2 + $0x8] sm:$0xf] %vm351_vm2, %v2817_v61  ;;  %2452 = vmatmul.mubr.msk.f32.vlgmr.msra.gmra.mrb[12].mxu1 %vm49_vm1, %v2817_v61  ;;  %2726 = vmatprep.subr.bf16.mxu0 %v2864_v3 }
 0x39e   :  { %2710 = vmatpush3.bf16.msra.mxu1 %v2933_v4  ;;  %2473 = vmatprep.mubr.msk.f32.mxu1 %vm2865_vm0, %v2866_v6 }
 0x39f   :  { %2711 = vmatprep.subr.bf16.mxu1 %v2864_v3 }
 0x3a2   :  { %2713 = vmatpush3.bf16.msra.mxu1 %v2944_v7 }
 0x3a3   :  { %2720 = vmatprep.subr.bf16.mxu1 %v2864_v3 }
 0x462   :  { %v868_v63 = vpop.f32.mrb[8].mxu0 }
 0x463   :  { %v874_v0 = vadd.f32 %v2156_v62, %v868_v63  ;;  %v2442_v1 = vpop.f32.mrb[9].mxu0 }
 0x464   :  { %v1945_v1 = vld [vmem:[%s3275_s7] sm:$0xff] }
 0x465   :  { %2818 = vtanh.f32 %v874_v0  ;;  %v1946_v0 = vld [vmem:[%s3275_s7 + $0x8] sm:$0xff] }
 0x46a   :  { %v1015_v2 = vpop.f32.mrb[10].mxu0 }
 0x46b   :  { %v2464_v5 = vpop.f32.mrb[11].mxu0 }
 0x46f   :  { %v2819_v8 = vpop.eup %2818 }
 0x470   :  { %v945_v9 = vpop.f32.mrb[12].mxu1  ;;  %2474 = vmatmul.mubr.msk.f32.vlgmr.msra.gmra.mrb[14].mxu1 %vm49_vm1, %v2819_v8 }
 0x471   :  { %v1016_v11 = vadd.f32 %v1015_v2, %v945_v9  ;;  %v2453_v12 = vpop.f32.mrb[13].mxu1  ;;  %2722 = vmatpush3.bf16.msra.mxu1 %v2992_v20  ;;  %2495 = vmatprep.mubr.msk.f32.mxu1 %vm2865_vm0, %v2866_v6 }
 0x472   :  { %2723 = vmatprep.subr.bf16.mxu1 %v2864_v3 }
 0x473   :  { %v1019_v14 = vadd.f32 %v3022_v31, %v1016_v11 }
 0x475   :  { %2820 = vtanh.f32 %v1019_v14  ;;  %2725 = vmatpush3.bf16.msra.mxu1 %v3002_v24  ;;  %v2027_v14 = vld [vmem:[%s3277_s9] sm:$0xff] }
 0x476   :  { %2732 = vmatprep.subr.bf16.mxu1 %v2864_v3 }
 0x478   :  { %2496 = vmatmul.mubr.msk.f32.vlgmr.msra.gmra.mrb[16].mxu1 %vm49_vm1, %v2819_v8 }
 0x479   :  { %2734 = vmatpush3.bf16.msra.mxu1 %v2962_v10  ;;  %2517 = vmatprep.mubr.msk.f32.mxu1 %vm2865_vm0, %v2866_v6 }
 0x47a   :  { %2735 = vmatprep.subr.bf16.mxu1 %v2864_v3 }
 0x47d   :  { %2737 = vmatpush3.bf16.msra.mxu1 %v2972_v13 }
 0x47e   :  { %2744 = vmatprep.subr.bf16.mxu1 %v2864_v3 }
 0x47f   :  { %v2821_v15 = vpop.eup %2820 }
 0x480   :  { %1021 = vst.msk [vmem:[#allocation2 + $0xc] sm:$0xf] %vm351_vm2, %v2821_v15  ;;  %2485 = vmatmul.mubr.msk.f32.vlgmr.msra.gmra.mrb[12].mxu0 %vm49_vm1, %v2821_v15  ;;  %v2028_v15 = vld [vmem:[%s3277_s9 + $0x8] sm:$0xff] }
 0x481   :  { %2728 = vmatpush3.bf16.msra.mxu0 %v2933_v4  ;;  %2506 = vmatprep.mubr.msk.f32.mxu0 %vm2865_vm0, %v2866_v6 }
 0x482   :  { %2729 = vmatprep.subr.bf16.mxu0 %v2864_v3 }
 0x485   :  { %2731 = vmatpush3.bf16.msra.mxu0 %v2944_v7 }
 0x486   :  { %2738 = vmatprep.subr.bf16.mxu0 %v2864_v3 }
 0x487   :  { %v1841_v56 = vld [vmem:[#allocation2 + $0x8] sm:$0xff] }
 0x543   :  { %v1091_v17 = vpop.f32.mrb[14].mxu1 }
 0x544   :  { %v1097_v18 = vadd.f32 %v2160_v16, %v1091_v17  ;;  %v2475_v19 = vpop.f32.mrb[15].mxu1  ;;  %v2029_v16 = vld [vmem:[%s3277_s9 + $0x10] sm:$0xff]  ;;  %v2789_v17 = vpack.c.bf16 %v2028_v15, %v2027_v14 }
 0x546   :  { %2822 = vtanh.f32 %v1097_v18  ;;  %v2030_v18 = vld [vmem:[%s3277_s9 + $0x18] sm:$0xff] }
 0x547   :  { %v2792_v19 = vpack.c.bf16 %v2030_v18, %v2029_v16 }
 0x54b   :  { %v1238_v21 = vpop.f32.mrb[16].mxu1 }
 0x54c   :  { %v2497_v22 = vpop.f32.mrb[17].mxu1 }
 0x550   :  { %v2823_v23 = vpop.eup %2822 }
 0x551   :  { %2507 = vmatmul.mubr.msk.f32.vlgmr.msra.gmra.mrb[14].mxu0 %vm49_vm1, %v2823_v23 }
 0x552   :  { %2740 = vmatpush3.bf16.msra.mxu0 %v2992_v20  ;;  %2528 = vmatprep.mubr.msk.f32.mxu0 %vm2865_vm0, %v2866_v6 }
 0x553   :  { %v1168_v25 = vpop.f32.mrb[12].mxu0  ;;  %2741 = vmatprep.subr.bf16.mxu0 %v2864_v3 }
 0x554   :  { %v1239_v26 = vadd.f32 %v1238_v21, %v1168_v25  ;;  %v2486_v27 = vpop.f32.mrb[13].mxu0  ;;  %v2032_v21 = vld [vmem:[%s3277_s9 + $0x28] sm:$0xff]  ;;  %v2034_v25 = vld [vmem:[%s3277_s9 + $0x38] sm:$0xff] }
 0x555   :  { %v1948_v27 = vld [vmem:[%s3275_s7 + $0x18] sm:$0xff] }
 0x556   :  { %v1242_v28 = vadd.f32 %v3022_v31, %v1239_v26  ;;  %2743 = vmatpush3.bf16.msra.mxu0 %v3002_v24 }
 0x557   :  { %2750 = vmatprep.subr.bf16.mxu0 %v2864_v3 }
 0x558   :  { %2824 = vtanh.f32 %v1242_v28  ;;  %v1947_v28 = vld [vmem:[%s3275_s7 + $0x10] sm:$0xff]  ;;  %s2867_s7 = smov [#allocation3]  }
 0x559   :  { %2529 = vmatmul.mubr.msk.f32.vlgmr.msra.gmra.mrb[16].mxu0 %vm49_vm1, %v2823_v23  ;;  %v2033_v23 = vld [vmem:[%s3277_s9 + $0x30] sm:$0xff] }
 0x55a   :  { %2752 = vmatpush3.bf16.msra.mxu0 %v2962_v10  ;;  %2550 = vmatprep.mubr.msk.f32.mxu0 %vm2865_vm0, %v2866_v6  ;;  %v2798_v26 = vpack.c.bf16 %v2034_v25, %v2033_v23 }
 0x55b   :  { %2753 = vmatprep.subr.bf16.mxu0 %v2864_v3 }
 0x55e   :  { %2755 = vmatpush3.bf16.msra.mxu0 %v2972_v13 }
 0x55f   :  { %2762 = vmatprep.subr.bf16.mxu0 %v2864_v3 }
 0x562   :  { %v2825_v29 = vpop.eup %2824 }
 0x563   :  { %1244 = vst.msk [vmem:[#allocation2 + $0x10] sm:$0xf] %vm351_vm2, %v2825_v29  ;;  %2518 = vmatmul.mubr.msk.f32.vlgmr.msra.gmra.mrb[18].mxu1 %vm49_vm1, %v2825_v29 }
 0x564   :  { %2746 = vmatpush3.bf16.msra.mxu1 %v2933_v4  ;;  %2539 = vmatprep.mubr.msk.f32.mxu1 %vm2865_vm0, %v2866_v6 }
 0x565   :  { %2747 = vmatprep.subr.bf16.mxu1 %v2864_v3 }
 0x568   :  { %2749 = vmatpush3.bf16.msra.mxu1 %v2944_v7 }
 0x569   :  { %2756 = vmatprep.subr.bf16.mxu1 %v2864_v3 }
 0x624   :  { %v1314_v32 = vpop.f32.mrb[14].mxu0 }
 0x625   :  { %v1320_v33 = vadd.f32 %v2164_v30, %v1314_v32  ;;  %v2508_v34 = vpop.f32.mrb[15].mxu0 }
 0x627   :  { %2826 = vtanh.f32 %v1320_v33 }
 0x62c   :  { %v1461_v35 = vpop.f32.mrb[16].mxu0 }
 0x62d   :  { %v2530_v36 = vpop.f32.mrb[17].mxu0 }
 0x631   :  { %v2827_v4 = vpop.eup %2826 }
 0x632   :  { %2540 = vmatmul.mubr.msk.f32.vlgmr.msra.gmra.mrb[20].mxu1 %vm49_vm1, %v2827_v4 }
 0x633   :  { %2758 = vmatpush3.bf16.msra.mxu1 %v2992_v20  ;;  %2561 = vmatprep.mubr.msk.f32.mxu1 %vm2865_vm0, %v2866_v6 }
 0x634   :  { %2759 = vmatprep.subr.bf16.mxu1 %v2864_v3 }
 0x636   :  { %v1391_v7 = vpop.f32.mrb[18].mxu1 }
 0x637   :  { %v1462_v37 = vadd.f32 %v1461_v35, %v1391_v7  ;;  %v2519_v38 = vpop.f32.mrb[19].mxu1  ;;  %2761 = vmatpush3.bf16.msra.mxu1 %v3002_v24  ;;  %v1953_v35 = vld [vmem:[%s3276_s8] sm:$0xf]  ;;  %s2135_s8 = sshll.u32 %s2867_s7, 4  ;;  %s2136_s8 = int_to_ptr.vmem [resolvable:$true] %s2135_s8 }
 0x638   :  { %2768 = vmatprep.subr.bf16.mxu1 %v2864_v3  ;;  %p2845_p1 = scmp.lt.s32.totalorder %s2136_s8, %s2136_s8 }
 0x639   :  { %v1465_v39 = vadd.f32 %v3022_v31, %v1462_v37 }
 0x63a   :  { %2562 = vmatmul.mubr.msk.f32.vlgmr.msra.gmra.mrb[22].mxu1 %vm49_vm1, %v2827_v4  ;;  %v2178_v4 = vld [vmem:[%s3274_s6] ss:$0 sm:$0xff]  ;;  %s2840_s6 = scalar_lea.vmem %s2136_s8, 64 }
 0x63b   :  { %2828 = vtanh.f32 %v1465_v39  ;;  %2770 = vmatpush3.bf16.msra.mxu1 %v2992_v20  ;;  %2583 = vmatprep.mubr.msk.f32.mxu1 %vm2865_vm0, %v2866_v6  ;;  %v1844_v20 = vld [vmem:[%s3273_s5] sm:$0xff]  ;;  %p2841_p0 = scmp.ne.s32.totalorder %s2136_s8, %s2840_s6  ;;  %p2846_p2 = scmp.lt.s32.totalorder %s2840_s6, %s2840_s6 }
 0x63c   :  { %2771 = vmatprep.subr.bf16.mxu1 %v2864_v3 }
 0x63d   :  { %p2847_p3 = por %p2846_p2, %p2845_p1 }
 0x63f   :  { %2773 = vmatpush3.bf16.msra.mxu1 %v3002_v24  ;;  %v1845_v24 = vld [vmem:[%s3273_s5 + $0x8] sm:$0xff]  ;;  %p2848_p4 = pnand %p2847_p3, %p2841_p0 }
 0x640   :  { %2782 = vmatprep.subr.bf16.mxu1 %v2864_v3  ;;  %v2774_v41 = vpack.c.bf16 %v1845_v24, %v1844_v20 }
 0x645   :  { %v2829_v40 = vpop.eup %2828 }
 0x646   :  { %1467 = vst.msk [vmem:[#allocation2 + $0x14] sm:$0xf] %vm351_vm2, %v2829_v40  ;;  %2551 = vmatmul.mubr.msk.f32.vlgmr.msra.gmra.mrb[18].mxu0 %vm49_vm1, %v2829_v40 }
 0x647   :  { %2764 = vmatpush3.bf16.msra.mxu0 %v2962_v10  ;;  %2572 = vmatprep.mubr.msk.f32.mxu0 %vm2865_vm0, %v2866_v6  ;;  %v2168_v10 = vld [vmem:[%s3268_s0 + $0x1c] sm:$0xf] }
 0x648   :  { %2765 = vmatprep.subr.bf16.mxu0 %v2864_v3 }
 0x64b   :  { %2767 = vmatpush3.bf16.msra.mxu0 %v2972_v13 }
 0x64c   :  { %2775 = vmatprep.subr.bf16.mxu0 %v2774_v41 }
 0x64d   :  { %v1842_v57 = vld [vmem:[#allocation2 + $0x10] sm:$0xff] }
 0x705   :  { %v1537_v42 = vpop.f32.mrb[20].mxu1 }
 0x706   :  { %v1543_v43 = vadd.f32 %v2168_v10, %v1537_v42  ;;  %v2541_v44 = vpop.f32.mrb[21].mxu1 }
 0x708   :  { %2830 = vtanh.f32 %v1543_v43 }
 0x70d   :  { %v1684_v45 = vpop.f32.mrb[22].mxu1 }
 0x70e   :  { %v2563_v13 = vpop.f32.mrb[23].mxu1 }
 0x712   :  { %v2831_v46 = vpop.eup %2830 }
 0x713   :  { %2584 = vmatmul.mubr.msk.f32.vlgmr.msra.gmra.mrb[24].mxu1 %vm49_vm1, %v2831_v46 }
 0x714   :  { %2608 = vmatprep.mubr.msk.f32.mxu1 %vm2865_vm0, %v2866_v6 }
 0x719   :  { %v1614_v47 = vpop.f32.mrb[18].mxu0 }
 0x71a   :  { %v1685_v48 = vadd.f32 %v1684_v45, %v1614_v47  ;;  %v2552_v49 = vpop.f32.mrb[19].mxu0 }
 0x71c   :  { %v1688_v50 = vadd.f32 %v3022_v31, %v1685_v48 }
 0x71e   :  { %2832 = vtanh.f32 %v1688_v50 }
 0x728   :  { %v2833_v54 = vpop.eup %2832 }
 0x729   :  { %1690 = vst.msk [vmem:[#allocation2 + $0x18] sm:$0xf] %vm351_vm2, %v2833_v54  ;;  %2573 = vmatmul.mubr.msk.f32.vlgmr.msra.gmra.mrb[20].mxu0 %vm49_vm1, %v2833_v54 }
 0x72a   :  { %2777 = vmatpush3.bf16.msra.mxu0 %v2774_v41  ;;  %2594 = vmatprep.mubr.msk.f32.mxu0 %vm49_vm1, %v1840_v55 }
 0x72b   :  { %2779 = vmatprep.subr.bf16.mxu0 %v2778_v53 }
 0x72e   :  { %2781 = vmatpush3.bf16.msra.mxu0 %v2778_v53 }
 0x72f   :  { %2788 = vmatprep.subr.bf16.mxu0 %v2864_v3 }
 0x731   :  { %2595 = vmatmul.mubr.msk.f32.vlgmr.msra.gmra.mrb[22].mxu0 %vm49_vm1, %v1841_v56 }
 0x732   :  { %2597 = vmatprep.mubr.msk.f32.mxu0 %vm49_vm1, %v1842_v57  ;;  %2790 = vmatpush3.bf16.msra.mxu0 %v2789_v17 }
 0x733   :  { %2791 = vmatprep.subr.bf16.mxu0 %v2864_v3 }
 0x736   :  { %2793 = vmatpush3.bf16.msra.mxu0 %v2792_v19 }
 0x737   :  { %2794 = vmatprep.subr.bf16.mxu0 %v2864_v3 }
 0x7e6   :  { %v1833_v58 = vpop.f32.mrb[24].mxu1 }
 0x7e7   :  { %v2585_v59 = vpop.f32.mrb[25].mxu1 }
 0x7fc   :  { %v1760_v60 = vpop.f32.mrb[20].mxu0 }
 0x7fd   :  { %v1834_v61 = vadd.f32 %v1833_v58, %v1760_v60  ;;  %v2574_v62 = vpop.f32.mrb[21].mxu0 }
 0x7ff   :  { %v1837_v63 = vadd.f32 %v3022_v31, %v1834_v61 }
 0x801   :  { %2834 = vtanh.f32 %v1837_v63 }
 0x804   :  { %v2596_v2 = vpop.f32.mrb[22].mxu0 }
 0x805   :  { %v1950_v5 = vmul.f32 %v2596_v2, %v1946_v0  ;;  %v1926_v8 = vpop.f32.mrb[23].mxu0 }
 0x806   :  { %v1949_v9 = vmul.f32 %v1945_v1, %v1926_v8 }
 0x808   :  { %v2783_v11 = vpack.c.bf16 %v1950_v5, %v1949_v9 }
 0x80a   :  { %2784 = vmatpush3.bf16.msra.mxu1 %v2783_v11 }
 0x80b   :  { %v2835_v12 = vpop.eup %2834  ;;  %2785 = vmatprep.subr.bf16.mxu1 %v2864_v3 }
 0x80c   :  { %1839 = vst.msk [vmem:[#allocation2 + $0x1c] sm:$0xf] %vm351_vm2, %v2835_v12 }
 0x813   :  { %v1843_v31 = vld [vmem:[#allocation2 + $0x18] sm:$0xff] }
 0x814   :  { %2598 = vmatmul.mubr.msk.f32.gmra.mrb[24].mxu0 %vm49_vm1, %v1843_v31 }
 0x815   :  { %2627 = vmatprep.mubr.msk.f32.mxu0 %vm2865_vm0, %v2866_v6  ;;  %v2031_v6 = vld [vmem:[%s3277_s9 + $0x20] sm:$0xff] }
 0x816   :  { %v2795_v22 = vpack.c.bf16 %v2032_v21, %v2031_v6 }
 0x818   :  { %2796 = vmatpush3.bf16.msra.mxu0 %v2795_v22 }
 0x819   :  { %2797 = vmatprep.subr.bf16.mxu0 %v2864_v3 }
 0x81c   :  { %2799 = vmatpush3.bf16.msra.mxu0 %v2798_v26 }
 0x8e7   :  { %v2599_v29 = vpop.f32.mrb[24].mxu0 }
 0x8e8   :  { %v1952_v30 = vmul.f32 %v2599_v29, %v1948_v27  ;;  %v1936_v32 = vpop.f32.mrb[25].mxu0 }
 0x8e9   :  { %v1951_v33 = vmul.f32 %v1947_v28, %v1936_v32 }
 0x8eb   :  { %v2786_v34 = vpack.c.bf16 %v1952_v30, %v1951_v33 }
 0x8ed   :  { %2787 = vmatpush3.bf16.msra.mxu1 %v2786_v34 }
 0x8f0   :  { %2609 = vmatmul.mubr.msk.f32.vlgmr.msra.gmra.mrb[26].mxu1 %vm49_vm1, %v1953_v35 }
 0x9c3   :  { %v2023_v3 = vpop.f32.mrb[26].mxu1 }
 0x9c4   :  { %v2610_v36 = vpop.f32.mrb[27].mxu1  ;;  %2628 = vmatmul.mubr.msk.f32.vlgmr.msra.gmra.mrb[26].mxu0 %vm2042_vm3, %v2023_v3 }
 0xa97   :  { %v2112_v7 = vpop.f32.mrb[26].mxu0 }
 0xa98   :  { %v2113_v37 = vadd.f32 %v2178_v4, %v2112_v7  ;;  %v2629_v38 = vpop.f32.mrb[27].mxu0 }
 0xa9a   :  { %v2117_v39 = vsel %vm2116_vm4, %v2113_v37, -inf }
 0xa9b   :  { %2118 = vmax.xlane.f32.xlu0 %v2117_v39 }
 0xb28   :  { %v2119_v40 = vpop.xlane.xlu0 %2118 }
 0xb29   :  { %v2120_v20 = vsub.f32 %v2113_v37, %v2119_v40 }
 0xb2b   :  { %v2121_v24 = vmul.f32 1.442695, %v2120_v20 }
 0xb2d   :  { %2836 = vpow2.f32 %v2121_v24 }
 0xb37   :  { %v2837_v41 = vpop.eup %2836 }
 0xb38   :  { %v2123_v10 = vsel %vm2116_vm4, %v2837_v41, 0.0 }
 0xb39   :  { %2124 = vadd.xlane.f32.xlu0 %v2123_v10 }
 0xbc6   :  { %v2125_v42 = vpop.xlane.xlu0 %2124 }
 0xbc7   :  { %2838 = vrcp.f32 %v2125_v42 }
 0xbd1   :  { %v2839_v43 = vpop.eup %2838 }
 0xbd2   :  { %v2127_v44 = vmul.f32 %v2839_v43, %v2837_v41 }
 0xbd4   :  { %2128 = vst.msk [vmem:[#allocation3] sm:$0xf] %vm2116_vm4, %v2127_v44 }
 0xbd5   :  { %2851 = shalt.err (!%p2848_p4)
}
 0xbd6   :  { %s2852_s17 = scalar_lea.hbm %s3278_s10, 64 }
 0xbd7   :  { %p2853_p5 = scmp.ne.s32.totalorder %s3278_s10, %s2852_s17  ;;  %p2856_p6 = scmp.lt.u32.totalorder %s2852_s17, %s3278_s10 }
 0xbd9   :  { %p2858_p7 = pnand %p2856_p6, %p2853_p5 }
 0xbdb   :  { %2861 = shalt.err (!%p2858_p7)
}
 0xbdc   :  { %2138 = dma.vmem_to_hbm [thread:$0]  %s2136_s8, 64, %s3278_s10, [#allocation4]  }
 0xbdd   :  { %2862 = dma.done.wait [#allocation4], 64  }
 0xbde   :  { %2863 = vsyncadd [#allocation4], 4294967232 }
 0xbdf   :  { %2142 = vsyncpa [#allocation4], 1 }

</bundles_post_ra>
